<compile_context>
chip_gen: v6e
topology: v6e:2x2x1
jax: 0.10.0
libtpu: 0.0.40
codegen_flags: <defaults>
</compile_context>

<pallas_src>
import functools
import math

import jax
import jax.numpy as jnp
from jax import lax
from jax.experimental import pallas as pl
from jax.experimental.pallas import tpu as pltpu

BN_EPS = 0.001                       # ocnn default bn_eps
_SQRT_2_OVER_PI = math.sqrt(2.0 / math.pi)


def _round_up(x, m):
  return (x + m - 1) // m * m


def _gelu_tanh(x):
  # tanh-approximation GELU (exp/tanh run on the otherwise-idle EUP slot).
  # TODO(synk): torch.nn.GELU() default is the exact erf form; the tanh
  # approximation differs by <1e-3 and is used uniformly here.
  x3 = x * x * x
  return 0.5 * x * (1.0 + jnp.tanh(_SQRT_2_OVER_PI * (x + 0.044715 * x3)))


def _vmem_limit(resident_bytes):
  # Explicit VMEM budget with headroom, clamped to a value valid on all gens
  # (<= 64 MiB physical on v7x).
  return int(min(64 * 1024 * 1024, max(16 * 1024 * 1024, 2 * resident_bytes)))


# ----------------------- pass 1: im2col GEMM + BN stats ------------------------
def _conv_stats_kernel(g_ref, w_ref, y_ref, stats_ref):
  """One N-tile: single im2col GEMM (bf16 -> f32) + partial BN statistics."""
  y = jnp.dot(g_ref[...], w_ref[...],
              preferred_element_type=jnp.float32)       # (tile_n, Cout_p) f32
  y_ref[...] = y
  # Per-tile partial BatchNorm statistics; padded rows of g are exactly zero,
  # so they contribute nothing (the wrapper divides by the true N).
  s1 = jnp.sum(y, axis=0, keepdims=True)
  s2 = jnp.sum(y * y, axis=0, keepdims=True)
  stats_ref[0] = jnp.concatenate([s1, s2], axis=0)      # (2, Cout_p)


# ----------------------- pass 2: folded BN affine + GELU -----------------------
def _bn_gelu_kernel(y_ref, scale_ref, shift_ref, o_ref):
  h = y_ref[...] * scale_ref[...] + shift_ref[...]
  o_ref[...] = _gelu_tanh(h)


# --------------------------- pallas_call builders ------------------------------
def _conv_call(g, w2, *, tile_n, cout_p):
  n_pad, kc_p = g.shape
  num_tiles = n_pad // tile_n
  resident = (2 * tile_n * kc_p * 2            # double-buffered g tile (bf16)
              + kc_p * cout_p * 2              # resident weight (bf16)
              + 2 * tile_n * cout_p * 4        # double-buffered y tile (f32)
              + 2 * 2 * cout_p * 4)            # stats tile
  cost = pl.CostEstimate(
      flops=2 * n_pad * kc_p * cout_p,
      transcendentals=0,
      bytes_accessed=(n_pad * kc_p * 2 + kc_p * cout_p * 2
                      + n_pad * cout_p * 4 + num_tiles * 2 * cout_p * 4))
  return pl.pallas_call(
      _conv_stats_kernel,
      grid=(num_tiles,),
      in_specs=[
          pl.BlockSpec((tile_n, kc_p), lambda i: (i, 0)),       # im2col slab tile
          pl.BlockSpec((kc_p, cout_p), lambda i: (0, 0)),       # packed bf16 weight
      ],
      out_specs=(
          pl.BlockSpec((tile_n, cout_p), lambda i: (i, 0)),     # lane-dense conv out
          pl.BlockSpec((1, 2, cout_p), lambda i: (i, 0, 0)),    # per-tile stats
      ),
      out_shape=(jax.ShapeDtypeStruct((n_pad, cout_p), jnp.float32),
                 jax.ShapeDtypeStruct((num_tiles, 2, cout_p), jnp.float32)),
      compiler_params=pltpu.CompilerParams(
          dimension_semantics=("parallel",),
          vmem_limit_bytes=_vmem_limit(resident)),
      cost_estimate=cost,
  )(g, w2)


def _bn_gelu_call(y, scale, shift, *, tile_n):
  n_pad, cout_p = y.shape
  num_tiles = n_pad // tile_n
  cost = pl.CostEstimate(
      flops=12 * n_pad * cout_p,
      transcendentals=n_pad * cout_p,
      bytes_accessed=2 * n_pad * cout_p * 4 + 2 * cout_p * 4)
  return pl.pallas_call(
      _bn_gelu_kernel,
      grid=(num_tiles,),
      in_specs=[pl.BlockSpec((tile_n, cout_p), lambda i: (i, 0)),
                pl.BlockSpec((1, cout_p), lambda i: (0, 0)),
                pl.BlockSpec((1, cout_p), lambda i: (0, 0))],
      out_specs=pl.BlockSpec((tile_n, cout_p), lambda i: (i, 0)),
      out_shape=jax.ShapeDtypeStruct((n_pad, cout_p), jnp.float32),
      compiler_params=pltpu.CompilerParams(dimension_semantics=("parallel",)),
      cost_estimate=cost,
  )(y, scale, shift)


# --------------------------------- wrapper -------------------------------------
def octree_conv_bn_gelu(data, neigh, weight, gamma, beta, *, tile_n=256,
                        eps=BN_EPS):
  """Forward of ocnn OctreeConvBnElu (stride=1, nempty=False) on TPU.  Jittable."""
  n, cin = data.shape
  kdim, cin_w, cout = weight.shape
  assert cin_w == cin and neigh.shape == (n, kdim)

  # ---------- wrapper-side layout plumbing (runs once, outside the kernels) ----
  cout_p = _round_up(cout, 128)                 # lane-dense output channels
  kc = kdim * cin
  kc_p = _round_up(kc, 128)                     # lane-dense contraction dim

  w2 = jnp.zeros((kc_p, cout_p), jnp.float32)
  w2 = w2.at[:kc, :cout].set(weight.reshape(kc, cout).astype(jnp.float32))
  w2 = w2.astype(jnp.bfloat16)                  # bf16 MXU operand

  gamma_p = jnp.ones((cout_p,), jnp.float32).at[:cout].set(gamma.astype(jnp.float32))
  beta_p = jnp.zeros((cout_p,), jnp.float32).at[:cout].set(beta.astype(jnp.float32))

  tile_n = max(16, min(_round_up(tile_n, 16), _round_up(n, 16)))
  n_pad = _round_up(n, tile_n)

  # XLA-side im2col gather: K neighbor rows per node, empty (-1) neighbors
  # masked to zero, rows padded to n_pad and columns padded to kc_p with zeros.
  mask = (neigh >= 0) & (neigh < n)
  safe = jnp.where(mask, neigh, 0).astype(jnp.int32)
  g = jnp.take(data.astype(jnp.float32), safe, axis=0)        # (n, K, Cin)
  g = jnp.where(mask[..., None], g, 0.0).reshape(n, kc)
  g_pad = jnp.zeros((n_pad, kc_p), jnp.bfloat16)
  g_pad = g_pad.at[:n, :kc].set(g.astype(jnp.bfloat16))

  # ---------- pass 1: octree conv GEMM + partial BN statistics -----------------
  y, stats = _conv_call(g_pad, w2, tile_n=tile_n, cout_p=cout_p)

  # ---------- BatchNorm1d statistics over the true N nodes ---------------------
  # Training-mode forward: biased variance over the node axis.  Running-stat
  # updates are a training side effect and do not affect the output.
  ssum = jnp.sum(stats[:, 0, :], axis=0)
  ssq = jnp.sum(stats[:, 1, :], axis=0)
  mean = ssum / n
  var = jnp.maximum(ssq / n - mean * mean, 0.0)
  inv = lax.rsqrt(var + eps)
  scale = (gamma_p * inv).reshape(1, cout_p)
  shift = (beta_p - mean * gamma_p * inv).reshape(1, cout_p)

  # ---------- pass 2: folded BN affine + GELU, tiled over N ---------------------
  out = _bn_gelu_call(y, scale, shift, tile_n=tile_n)
  return out[:n, :cout]


# -------------------------------- reference ------------------------------------
def _reference_forward(data, neigh, weight, gamma, beta, eps=BN_EPS):
  n, cin = data.shape
  kdim, _, cout = weight.shape
  mask = neigh >= 0
  safe = jnp.where(mask, neigh, 0)
  g = jnp.take(data, safe, axis=0)                             # (n, K, Cin)
  g = jnp.where(mask[..., None], g, 0.0).reshape(n, kdim * cin)
  y = jnp.dot(g.astype(jnp.bfloat16),
              weight.reshape(kdim * cin, cout).astype(jnp.bfloat16),
              preferred_element_type=jnp.float32)
  mean = jnp.sum(y, axis=0) / n
  var = jnp.maximum(jnp.sum(y * y, axis=0) / n - mean * mean, 0.0)
  h = (y - mean) * lax.rsqrt(var + eps) * gamma + beta
  return _gelu_tanh(h)


# ---------------------------------- driver --------------------------------------
if __name__ == "__main__":
  key = jax.random.PRNGKey(0)
  N, Cin, Cout, K = 200, 32, 64, 27

  ks = jax.random.split(key, 5)
  data = jax.random.normal(ks[0], (N, Cin), jnp.float32)

  # Synthetic octree neighborhood table (stand-in for octree.get_neigh(depth)):
  # 27 taps per node, -1 == empty neighbor, center tap == the node itself.
  neigh = jax.random.randint(ks[1], (N, K), -1, N, dtype=jnp.int32)
  neigh = neigh.at[:, K // 2].set(jnp.arange(N, dtype=jnp.int32))

  weight = 0.05 * jax.random.normal(ks[2], (K, Cin, Cout), jnp.float32)
  gamma = 1.0 + 0.1 * jax.random.normal(ks[3], (Cout,), jnp.float32)
  beta = 0.1 * jax.random.normal(ks[4], (Cout,), jnp.float32)

  fwd = jax.jit(functools.partial(octree_conv_bn_gelu, tile_n=64))
  out = jax.block_until_ready(fwd(data, neigh, weight, gamma, beta))

  assert out.shape == (N, Cout), out.shape
  assert out.dtype == jnp.float32
  assert bool(jnp.all(jnp.isfinite(out)))

  ref = _reference_forward(data, neigh, weight, gamma, beta)
  err = float(jnp.max(jnp.abs(out - ref)))
  assert err < 5e-2, f"max abs err vs reference: {err}"

  print("KERNEL_OK")
</pallas_src>

<mosaic_0001>
module attributes {stable_mosaic.version = 11 : i64} {
  func.func @_bn_gelu_kernel(%arg0: i32, %arg1: memref<64x128xf32, #tpu.memory_space<vmem>>, %arg2: memref<1x128xf32, #tpu.memory_space<vmem>>, %arg3: memref<1x128xf32, #tpu.memory_space<vmem>>, %arg4: memref<64x128xf32, #tpu.memory_space<vmem>>) attributes {dimension_semantics = [#tpu.dimension_semantics<parallel>], iteration_bounds = array<i64: 4>, scalar_prefetch = 0 : i64, scratch_operands = 0 : i64, tpu.core_type = #tpu.core_type<tc>, window_params = [{transform_indices = @transform_0, window_bounds = array<i64: 64, 128>}, {pipeline_mode = #tpu.pipeline_mode<synchronous>, transform_indices = @transform_1, window_bounds = array<i64: 1, 128>}, {pipeline_mode = #tpu.pipeline_mode<synchronous>, transform_indices = @transform_2, window_bounds = array<i64: 1, 128>}, {transform_indices = @transform_3, window_bounds = array<i64: 64, 128>}]} {
    %c0 = arith.constant 0 : index
    %c0_0 = arith.constant 0 : index
    %0 = vector.load %arg1[%c0, %c0_0] : memref<64x128xf32, #tpu.memory_space<vmem>>, vector<64x128xf32>
    %c0_1 = arith.constant 0 : index
    %c0_2 = arith.constant 0 : index
    %1 = vector.load %arg2[%c0_1, %c0_2] : memref<1x128xf32, #tpu.memory_space<vmem>>, vector<1x128xf32>
    %2 = vector.broadcast %1 : vector<1x128xf32> to vector<64x128xf32>
    %3 = arith.mulf %0, %2 : vector<64x128xf32>
    %c0_3 = arith.constant 0 : index
    %c0_4 = arith.constant 0 : index
    %4 = vector.load %arg3[%c0_3, %c0_4] : memref<1x128xf32, #tpu.memory_space<vmem>>, vector<1x128xf32>
    %5 = vector.broadcast %4 : vector<1x128xf32> to vector<64x128xf32>
    %6 = arith.addf %3, %5 : vector<64x128xf32>
    %7 = arith.mulf %6, %6 : vector<64x128xf32>
    %8 = arith.mulf %7, %6 : vector<64x128xf32>
    %cst = arith.constant 5.000000e-01 : f32
    %9 = vector.broadcast %cst : f32 to vector<64x128xf32>
    %10 = arith.mulf %9, %6 : vector<64x128xf32>
    %cst_5 = arith.constant 4.471500e-02 : f32
    %11 = vector.broadcast %cst_5 : f32 to vector<64x128xf32>
    %12 = arith.mulf %11, %8 : vector<64x128xf32>
    %13 = arith.addf %6, %12 : vector<64x128xf32>
    %cst_6 = arith.constant 0.797884583 : f32
    %14 = vector.broadcast %cst_6 : f32 to vector<64x128xf32>
    %15 = arith.mulf %14, %13 : vector<64x128xf32>
    %16 = math.tanh %15 : vector<64x128xf32>
    %cst_7 = arith.constant 1.000000e+00 : f32
    %17 = vector.broadcast %cst_7 : f32 to vector<64x128xf32>
    %18 = arith.addf %17, %16 : vector<64x128xf32>
    %19 = arith.mulf %10, %18 : vector<64x128xf32>
    %c0_8 = arith.constant 0 : index
    %c0_9 = arith.constant 0 : index
    %20 = vector.load %arg4[%c0_8, %c0_9] : memref<64x128xf32, #tpu.memory_space<vmem>>, vector<64x128xf32>
    tpu.vector_store %arg4[%c0_8, %c0_9], %19 {strides = array<i32>} : memref<64x128xf32, #tpu.memory_space<vmem>>, vector<64x128xf32>,
    return
  }
  func.func @transform_0(%arg0: i32) -> (i32, i32) {
    %c0_i32 = arith.constant 0 : i32
    %c0_i32_0 = arith.constant 0 : i32
    return %arg0, %c0_i32 : i32, i32
  }
  func.func @transform_1(%arg0: i32) -> (i32, i32) {
    %c0_i32 = arith.constant 0 : i32
    %c0_i32_0 = arith.constant 0 : i32
    %c0_i32_1 = arith.constant 0 : i32
    return %c0_i32, %c0_i32_0 : i32, i32
  }
  func.func @transform_2(%arg0: i32) -> (i32, i32) {
    %c0_i32 = arith.constant 0 : i32
    %c0_i32_0 = arith.constant 0 : i32
    %c0_i32_1 = arith.constant 0 : i32
    return %c0_i32, %c0_i32_0 : i32, i32
  }
  func.func @transform_3(%arg0: i32) -> (i32, i32) {
    %c0_i32 = arith.constant 0 : i32
    %c0_i32_0 = arith.constant 0 : i32
    return %arg0, %c0_i32 : i32, i32
  }
}

module attributes {stable_mosaic.version = 11 : i64} {
  func.func @_conv_stats_kernel(%arg0: i32, %arg1: memref<64x896xbf16, #tpu.memory_space<vmem>>, %arg2: memref<896x128xbf16, #tpu.memory_space<vmem>>, %arg3: memref<64x128xf32, #tpu.memory_space<vmem>>, %arg4: memref<1x2x128xf32, #tpu.memory_space<vmem>>) attributes {dimension_semantics = [#tpu.dimension_semantics<parallel>], iteration_bounds = array<i64: 4>, scalar_prefetch = 0 : i64, scratch_operands = 0 : i64, tpu.core_type = #tpu.core_type<tc>, window_params = [{transform_indices = @transform_0, window_bounds = array<i64: 64, 896>}, {pipeline_mode = #tpu.pipeline_mode<synchronous>, transform_indices = @transform_1, window_bounds = array<i64: 896, 128>}, {transform_indices = @transform_2, window_bounds = array<i64: 64, 128>}, {transform_indices = @transform_3, window_bounds = array<i64: 1, 2, 128>}]} {
    %c0 = arith.constant 0 : index
    %c0_0 = arith.constant 0 : index
    %0 = vector.load %arg1[%c0, %c0_0] : memref<64x896xbf16, #tpu.memory_space<vmem>>, vector<64x896xbf16>
    %c0_1 = arith.constant 0 : index
    %c0_2 = arith.constant 0 : index
    %1 = vector.load %arg2[%c0_1, %c0_2] : memref<896x128xbf16, #tpu.memory_space<vmem>>, vector<896x128xbf16>
    %cst = arith.constant dense<0.000000e+00> : vector<64x128xf32>
    %2 = tpu.matmul %0, %1, %cst {dimension_numbers = #tpu.dot_dimension_numbers<[1], [0], [0], [1], [0, 0, 1, 1], [], []>} : vector<64x896xbf16>, vector<896x128xbf16>, vector<64x128xf32> -> vector<64x128xf32>
    %c0_3 = arith.constant 0 : index
    %c0_4 = arith.constant 0 : index
    %3 = vector.load %arg3[%c0_3, %c0_4] : memref<64x128xf32, #tpu.memory_space<vmem>>, vector<64x128xf32>
    tpu.vector_store %arg3[%c0_3, %c0_4], %2 {strides = array<i32>} : memref<64x128xf32, #tpu.memory_space<vmem>>, vector<64x128xf32>,
    %cst_5 = arith.constant dense<0.000000e+00> : vector<128xf32>
    %4 = vector.multi_reduction <add>, %2, %cst_5 [0] : vector<64x128xf32> to vector<128xf32>
    %5 = vector.shape_cast %4 : vector<128xf32> to vector<1x128xf32>
    %6 = arith.mulf %2, %2 : vector<64x128xf32>
    %cst_6 = arith.constant dense<0.000000e+00> : vector<128xf32>
    %7 = vector.multi_reduction <add>, %6, %cst_6 [0] : vector<64x128xf32> to vector<128xf32>
    %8 = vector.shape_cast %7 : vector<128xf32> to vector<1x128xf32>
    %9 = tpu.concatenate %5, %8 in 0 : vector<1x128xf32>, vector<1x128xf32> -> vector<2x128xf32>
    %c0_7 = arith.constant 0 : index
    %c0_8 = arith.constant 0 : index
    %c0_9 = arith.constant 0 : index
    %10 = vector.load %arg4[%c0_7, %c0_8, %c0_9] : memref<1x2x128xf32, #tpu.memory_space<vmem>>, vector<1x2x128xf32>
    %11 = vector.shape_cast %10 : vector<1x2x128xf32> to vector<2x128xf32>
    %12 = vector.shape_cast %9 : vector<2x128xf32> to vector<1x2x128xf32>
    tpu.vector_store %arg4[%c0_7, %c0_8, %c0_9], %12 {strides = array<i32>} : memref<1x2x128xf32, #tpu.memory_space<vmem>>, vector<1x2x128xf32>,
    return
  }
  func.func @transform_0(%arg0: i32) -> (i32, i32) {
    %c0_i32 = arith.constant 0 : i32
    %c0_i32_0 = arith.constant 0 : i32
    return %arg0, %c0_i32 : i32, i32
  }
  func.func @transform_1(%arg0: i32) -> (i32, i32) {
    %c0_i32 = arith.constant 0 : i32
    %c0_i32_0 = arith.constant 0 : i32
    %c0_i32_1 = arith.constant 0 : i32
    return %c0_i32, %c0_i32_0 : i32, i32
  }
  func.func @transform_2(%arg0: i32) -> (i32, i32) {
    %c0_i32 = arith.constant 0 : i32
    %c0_i32_0 = arith.constant 0 : i32
    return %arg0, %c0_i32 : i32, i32
  }
  func.func @transform_3(%arg0: i32) -> (i32, i32, i32) {
    %c0_i32 = arith.constant 0 : i32
    %c0_i32_0 = arith.constant 0 : i32
    %c0_i32_1 = arith.constant 0 : i32
    return %arg0, %c0_i32, %c0_i32_0 : i32, i32, i32
  }
}

</mosaic_0001>

<bundles_post_ra>
// kernel: octree_conv_bn_gelu.3
= control target key start
LH: loop header
LB: loop body
LE: loop exit
PB: predicated region body
PF: predicated region fallthrough
CT: control target
= control target key end

     0   :  { %s413_s12 = smov 0   ;;  %s481_s0 = inlined_call_operand.vmem [shape: f32[256,128], index: 0, kind: input, shape index: {}]   ;;  %s482_s1 = inlined_call_operand.vmem [shape: f32[1,128], index: 1, kind: input, shape index: {}]   ;;  %s483_s2 = inlined_call_operand.vmem [shape: f32[1,128], index: 2, kind: input, shape index: {}]   ;;  %s484_s3 = inlined_call_operand.vmem [shape: f32[256,128], index: 3, kind: output, shape index: {}]  }
   0x1 LB: > { %s348_s13 = sadd.s32 4294967295, %s391_s12   ;;  %p352_p0 = scmp.ge.s32.totalorder %s391_s12, 1  ;;  %s391_s12 = sphi %s413_s12, %s13_s12  }
   0x2   : > { %p138_p1 = scmp.lt.s32.totalorder %s391_s12, 5 }
   0x4   : > { %p139_p2 = pnand %p352_p0, %p138_p1 }
   0x5   : > { %s353_s14 = sshll.u32 (!%p139_p2), %s348_s13, 3 }
   0x6   : > { %142 = sbr.rel (%p139_p2) target bundleno = 55 (0x37), region = 32  ;;  %p163_p3 = scmp.lt.s32.totalorder (!%p139_p2), %s353_s14, 31 }
   0xb   : > { %s486_s14 = smov (!%p163_p3, %s353_s14), 31  ;;  %v357_v0 = vld [vmem:[%s482_s1] ss:$0 sm:$0xff] }
   0xc   : > { %s354_s15 = sshll.u32 %s486_s14, 3  ;;  %v358_v1 = vld [vmem:[%s483_s2] ss:$0 sm:$0xff] }
   0xd   : > { %s166_s20 = scalar_lea.vmem %s481_s0, %s354_s15  ;;  %s464_s25 = scalar_lea.vmem %s484_s3, %s354_s15 }
   0xe   : > { %v174_v2 = vld [vmem:[%s166_s20] sm:$0xff]  ;;  %v175_v3 = vld [vmem:[%s166_s20 + $0x8] sm:$0xff]  ;;  %v176_v4 = vld [vmem:[%s166_s20 + $0x10] sm:$0xff] }
   0xf   : > { %v189_v5 = vmul.f32 %v357_v0, %v174_v2  ;;  %v190_v6 = vmul.f32 %v357_v0, %v175_v3  ;;  %v191_v7 = vmul.f32 %v357_v0, %v176_v4  ;;  %v177_v8 = vld [vmem:[%s166_s20 + $0x18] sm:$0xff]  ;;  %v178_v9 = vld [vmem:[%s166_s20 + $0x20] sm:$0xff]  ;;  %v179_v10 = vld [vmem:[%s166_s20 + $0x28] sm:$0xff] }
  0x10   : > { %v192_v11 = vmul.f32 %v357_v0, %v177_v8  ;;  %v193_v12 = vmul.f32 %v357_v0, %v178_v9  ;;  %v194_v13 = vmul.f32 %v357_v0, %v179_v10  ;;  %v180_v14 = vld [vmem:[%s166_s20 + $0x30] sm:$0xff]  ;;  %v181_v18 = vld [vmem:[%s166_s20 + $0x38] sm:$0xff] }
  0x11   : > { %v204_v15 = vadd.f32 %v358_v1, %v189_v5  ;;  %v205_v16 = vadd.f32 %v358_v1, %v190_v6  ;;  %v206_v17 = vadd.f32 %v358_v1, %v191_v7  ;;  %v195_v24 = vmul.f32 %v357_v0, %v180_v14 }
  0x12   : > { %v435_v19 = vadd.f32 %v358_v1, %v192_v11  ;;  %v437_v20 = vadd.f32 %v358_v1, %v193_v12  ;;  %v439_v21 = vadd.f32 %v358_v1, %v194_v13  ;;  %v196_v27 = vmul.f32 %v357_v0, %v181_v18 }
  0x13   : > { %v212_v22 = vmul.f32 %v204_v15, %v204_v15  ;;  %v213_v23 = vmul.f32 %v205_v16, %v205_v16  ;;  %v214_v25 = vmul.f32 %v206_v17, %v206_v17  ;;  %v210_v37 = vadd.f32 %v358_v1, %v195_v24 }
  0x14   : > { %v215_v26 = vmul.f32 %v435_v19, %v435_v19  ;;  %v216_v30 = vmul.f32 %v437_v20, %v437_v20  ;;  %v217_v33 = vmul.f32 %v439_v21, %v439_v21  ;;  %v450_v41 = vadd.f32 %v358_v1, %v196_v27 }
  0x15   : > { %v220_v28 = vmul.f32 %v212_v22, %v204_v15  ;;  %v221_v29 = vmul.f32 %v213_v23, %v205_v16  ;;  %v222_v31 = vmul.f32 %v214_v25, %v206_v17  ;;  %v218_v45 = vmul.f32 %v210_v37, %v210_v37 }
  0x16   : > { %v223_v32 = vmul.f32 %v215_v26, %v435_v19  ;;  %v224_v36 = vmul.f32 %v216_v30, %v437_v20  ;;  %v225_v40 = vmul.f32 %v217_v33, %v439_v21  ;;  %v219_v56 = vmul.f32 %v450_v41, %v450_v41 }
  0x17   : > { %v236_v34 = vmul.f32 0.044715, %v220_v28  ;;  %v237_v35 = vmul.f32 0.044715, %v221_v29  ;;  %v238_v38 = vmul.f32 0.044715, %v222_v31  ;;  %v226_v52 = vmul.f32 %v218_v45, %v210_v37 }
  0x18   : > { %v239_v39 = vmul.f32 0.044715, %v223_v32  ;;  %v240_v44 = vmul.f32 0.044715, %v224_v36  ;;  %v241_v48 = vmul.f32 0.044715, %v225_v40  ;;  %v227_v60 = vmul.f32 %v219_v56, %v450_v41 }
  0x19   : > { %v244_v42 = vadd.f32 %v236_v34, %v204_v15  ;;  %v245_v43 = vadd.f32 %v237_v35, %v205_v16  ;;  %v246_v46 = vadd.f32 %v238_v38, %v206_v17  ;;  %v242_v58 = vmul.f32 0.044715, %v226_v52 }
  0x1a   : > { %v247_v47 = vadd.f32 %v239_v39, %v435_v19  ;;  %v248_v51 = vadd.f32 %v240_v44, %v437_v20  ;;  %v249_v55 = vadd.f32 %v241_v48, %v439_v21  ;;  %v243_v62 = vmul.f32 0.044715, %v227_v60 }
  0x1b   : > { %v252_v49 = vmul.f32 0.7978846, %v244_v42  ;;  %v253_v50 = vmul.f32 0.7978846, %v245_v43  ;;  %v254_v53 = vmul.f32 0.7978846, %v246_v46  ;;  %v250_v61 = vadd.f32 %v242_v58, %v210_v37 }
  0x1c   : > { %v255_v54 = vmul.f32 0.7978846, %v247_v47  ;;  %v256_v57 = vmul.f32 0.7978846, %v248_v51  ;;  %v257_v59 = vmul.f32 0.7978846, %v249_v55  ;;  %v251_v0 = vadd.f32 %v243_v62, %v450_v41 }
  0x1d   : > { %369 = vtanh.f32 %v252_v49  ;;  %v258_v63 = vmul.f32 0.7978846, %v250_v61  ;;  %v228_v2 = vmul.f32 0.5, %v204_v15  ;;  %v229_v4 = vmul.f32 0.5, %v205_v16 }
  0x1e   : > { %371 = vtanh.f32 %v253_v50  ;;  %v259_v1 = vmul.f32 0.7978846, %v251_v0  ;;  %v230_v7 = vmul.f32 0.5, %v206_v17  ;;  %v231_v10 = vmul.f32 0.5, %v435_v19 }
  0x1f   : > { %373 = vtanh.f32 %v254_v53  ;;  %v232_v14 = vmul.f32 0.5, %v437_v20  ;;  %v233_v18 = vmul.f32 0.5, %v439_v21  ;;  %v234_v25 = vmul.f32 0.5, %v210_v37 }
  0x20   : > { %375 = vtanh.f32 %v255_v54  ;;  %v235_v21 = vmul.f32 0.5, %v450_v41 }
  0x21   : > { %377 = vtanh.f32 %v256_v57 }
  0x22   : > { %379 = vtanh.f32 %v257_v59 }
  0x23   : > { %381 = vtanh.f32 %v258_v63 }
  0x24   : > { %383 = vtanh.f32 %v259_v1 }
  0x2a   : > { %v370_v3 = vpop.eup %369 }
  0x2b   : > { %v372_v5 = vpop.eup %371  ;;  %v268_v6 = vadd.f32 1.0, %v370_v3 }
  0x2c   : > { %v374_v8 = vpop.eup %373  ;;  %v269_v9 = vadd.f32 1.0, %v372_v5 }
  0x2d   : > { %v376_v11 = vpop.eup %375  ;;  %v276_v12 = vmul.f32 %v268_v6, %v228_v2  ;;  %v270_v13 = vadd.f32 1.0, %v374_v8 }
  0x2e   : > { %v378_v15 = vpop.eup %377  ;;  %v277_v16 = vmul.f32 %v269_v9, %v229_v4  ;;  %v271_v17 = vadd.f32 1.0, %v376_v11 }
  0x2f   : > { %v380_v22 = vpop.eup %379  ;;  %284 = vst [vmem:[%s464_s25] sm:$0xff] %v276_v12  ;;  %v278_v23 = vmul.f32 %v270_v13, %v230_v7  ;;  %v272_v24 = vadd.f32 1.0, %v378_v15 }
  0x30   : > { %v382_v19 = vpop.eup %381  ;;  %285 = vst [vmem:[%s464_s25 + $0x8] sm:$0xff] %v277_v16  ;;  %v279_v26 = vmul.f32 %v271_v17, %v231_v10  ;;  %v273_v27 = vadd.f32 1.0, %v380_v22 }
  0x31   : > { %286 = vst [vmem:[%s464_s25 + $0x10] sm:$0xff] %v278_v23  ;;  %v280_v20 = vmul.f32 %v272_v24, %v232_v14  ;;  %v274_v28 = vadd.f32 1.0, %v382_v19  ;;  %v384_v30 = vpop.eup %383 }
  0x32   : > { %287 = vst [vmem:[%s464_s25 + $0x18] sm:$0xff] %v279_v26  ;;  %v281_v29 = vmul.f32 %v273_v27, %v233_v18  ;;  %v275_v32 = vadd.f32 1.0, %v384_v30 }
  0x33   : > { %288 = vst [vmem:[%s464_s25 + $0x20] sm:$0xff] %v280_v20  ;;  %v282_v31 = vmul.f32 %v274_v28, %v234_v25 }
  0x34   : > { %289 = vst [vmem:[%s464_s25 + $0x28] sm:$0xff] %v281_v29  ;;  %v283_v33 = vmul.f32 %v275_v32, %v235_v21 }
  0x35   : > { %290 = vst [vmem:[%s464_s25 + $0x30] sm:$0xff] %v282_v31 }
  0x36   : > { %291 = vst [vmem:[%s464_s25 + $0x38] sm:$0xff] %v283_v33 }
  0x37 PF: > { %s13_s12 = sadd.s32 1, %s391_s12  }
  0x38   : > { %p10_p4 = scmp.ge.s32.totalorder %s13_s12, 6  }
  0x3a   :  { %12 = sbr.rel (!%p10_p4) target bundleno = 1 (0x1), region = 62 }

// kernel: octree_conv_bn_gelu.2
= control target key start
LH: loop header
LB: loop body
LE: loop exit
PB: predicated region body
PF: predicated region fallthrough
CT: control target
= control target key end

     0   :  { %s1590_s12 = smov 0   ;;  %s1851_s0 = inlined_call_operand.vmem [shape: bf16[256,896], index: 0, kind: input, shape index: {}]   ;;  %s1852_s1 = inlined_call_operand.vmem [shape: bf16[896,128], index: 1, kind: input, shape index: {}]   ;;  %s1853_s2 = inlined_call_operand.vmem [shape: f32[256,128], index: 2, kind: output, shape index: {0}]   ;;  %s1854_s3 = inlined_call_operand.vmem [shape: f32[4,2,128], index: 3, kind: output, shape index: {1}]  }
   0x1 LB: > { %s1596_s13 = sadd.s32 4294967295, %s1568_s12   ;;  %p1209_p0 = scmp.ge.s32.totalorder %s1568_s12, 1  ;;  %s1568_s12 = sphi %s1590_s12, %s14_s12  }
   0x2   : > { %p142_p1 = scmp.lt.s32.totalorder %s1568_s12, 5 }
   0x4   : > { %p143_p2 = pnand %p1209_p0, %p142_p1 }
   0x5   : > { %s1210_s19 = sshll.u32 (!%p143_p2), %s1596_s13, 3  ;;  %p184_p4 = scmp.lt.s32.totalorder (!%p143_p2), %s1596_s13, 3 }
   0x6   : > { %146 = sbr.rel (%p143_p2) target bundleno = 324 (0x144), region = 28  ;;  %p172_p3 = scmp.lt.s32.totalorder (!%p143_p2), %s1210_s19, 31 }
   0xb   : > { %v1466_v0 = vld [vmem:[%s1852_s1 + $0x78] sm:$0xff]   ;;  %v1470_v4 = vld [vmem:[%s1852_s1 + $0x70] sm:$0xff]   ;;  %v1474_v8 = vld [vmem:[%s1852_s1 + $0x68] sm:$0xff]   ;;  %s1856_s19 = smov (!%p172_p3, %s1210_s19), 31  ;;  %s1858_s13 = smov (!%p184_p4, %s1596_s13), 3  ;;  %vm1115_vm0 = vcmask 1040384  }
   0xc   : > { %v1467_v1 = vld [vmem:[%s1852_s1 + $0xf8] sm:$0xff]   ;;  %1301 = vmatprep.subr.bf16.mxu0 %v1466_v0  ;;  %v1471_v5 = vld [vmem:[%s1852_s1 + $0xf0] sm:$0xff]   ;;  %v1475_v9 = vld [vmem:[%s1852_s1 + $0xe8] sm:$0xff]   ;;  %s1457_s17 = smul.u32 28, %s1856_s19 }
   0xd   : > { %v1468_v2 = vld [vmem:[%s1852_s1 + $0x38] sm:$0xff]   ;;  %1341 = vmatprep.subr.bf16.mxu1 %v1467_v1  ;;  %v1472_v6 = vld [vmem:[%s1852_s1 + $0x30] sm:$0xff]   ;;  %v1476_v10 = vld [vmem:[%s1852_s1 + $0x28] sm:$0xff]  }
   0xe   : > { %v1469_v3 = vld [vmem:[%s1852_s1 + $0xb8] sm:$0xff]   ;;  %1302 = vmatpush3.bf16.msra.mxu0 %v1468_v2  ;;  %v1473_v7 = vld [vmem:[%s1852_s1 + $0xb0] sm:$0xff]   ;;  %v1477_v11 = vld [vmem:[%s1852_s1 + $0xa8] sm:$0xff]   ;;  %s1697_s29 = scalar_lea.vmem %s1851_s0, %s1457_s17 }
   0xf   : > { %1342 = vmatpush3.bf16.msra.mxu1 %v1469_v3  ;;  %1303 = vmatprep.subr.bf16.mxu0 %v1470_v4  ;;  %v1478_v12 = vld [vmem:[%s1852_s1 + $0x60] sm:$0xff]   ;;  %v1482_v16 = vld [vmem:[%s1852_s1 + $0x58] sm:$0xff]   ;;  %v1486_v20 = vld [vmem:[%s1852_s1 + $0x50] sm:$0xff]  }
  0x10   : > { %1343 = vmatprep.subr.bf16.mxu1 %v1471_v5  ;;  %v1479_v13 = vld [vmem:[%s1852_s1 + $0xe0] sm:$0xff]   ;;  %v1483_v17 = vld [vmem:[%s1852_s1 + $0xd8] sm:$0xff]   ;;  %v1487_v21 = vld [vmem:[%s1852_s1 + $0xd0] sm:$0xff]  }
  0x11   : > { %v1480_v14 = vld [vmem:[%s1852_s1 + $0x20] sm:$0xff]   ;;  %v1484_v18 = vld [vmem:[%s1852_s1 + $0x18] sm:$0xff]   ;;  %v1488_v22 = vld [vmem:[%s1852_s1 + $0x10] sm:$0xff]  }
  0x12   : > { %1304 = vmatpush3.bf16.msra.mxu0 %v1472_v6  ;;  %v1481_v15 = vld [vmem:[%s1852_s1 + $0xa0] sm:$0xff]   ;;  %v1485_v19 = vld [vmem:[%s1852_s1 + $0x98] sm:$0xff]   ;;  %v1489_v23 = vld [vmem:[%s1852_s1 + $0x90] sm:$0xff]  }
  0x13   : > { %1344 = vmatpush3.bf16.msra.mxu1 %v1473_v7  ;;  %1305 = vmatprep.subr.bf16.mxu0 %v1474_v8  ;;  %v1490_v24 = vld [vmem:[%s1852_s1 + $0x48] sm:$0xff]   ;;  %v1494_v28 = vld [vmem:[%s1852_s1 + $0x40] sm:$0xff]   ;;  %v1504_v36 = vld [vmem:[%s1852_s1 + $0x178] sm:$0xff]  }
  0x14   : > { %1345 = vmatprep.subr.bf16.mxu1 %v1475_v9  ;;  %v1491_v25 = vld [vmem:[%s1852_s1 + $0xc8] sm:$0xff]   ;;  %v1495_v29 = vld [vmem:[%s1852_s1 + $0xc0] sm:$0xff]   ;;  %v1505_v37 = vld [vmem:[%s1852_s1 + $0x138] sm:$0xff]  }
  0x15   : > { %v1492_v26 = vld [vmem:[%s1852_s1 + $0x8] sm:$0xff]   ;;  %v1496_v30 = vld [vmem:[%s1852_s1] sm:$0xff]   ;;  %v1506_v38 = vld [vmem:[%s1852_s1 + $0x170] sm:$0xff]  }
  0x16   : > { %1306 = vmatpush3.bf16.msra.mxu0 %v1476_v10  ;;  %v1493_v27 = vld [vmem:[%s1852_s1 + $0x88] sm:$0xff]   ;;  %v1497_v31 = vld [vmem:[%s1852_s1 + $0x80] sm:$0xff]   ;;  %v1507_v39 = vld [vmem:[%s1852_s1 + $0x1b8] sm:$0xff]  }
  0x17   : > { %1346 = vmatpush3.bf16.msra.mxu1 %v1477_v11  ;;  %1307 = vmatprep.subr.bf16.mxu0 %v1478_v12  ;;  %v1498_v32 = vld [vmem:[%s1697_s29] ss:$28 sps:$4 sm:$0xff]   ;;  %v1501_v34 = vld [vmem:[%s1697_s29 + $0x8] ss:$28 sps:$4 sm:$0xff]   ;;  %v1508_v40 = vld [vmem:[%s1852_s1 + $0x130] sm:$0xff]  }
  0x18   : > { %1347 = vmatprep.subr.bf16.mxu1 %v1479_v13  ;;  %v1500_v33 = vld [vmem:[%s1697_s29 + $0x4] ss:$28 sps:$4 sm:$0xff]   ;;  %v1503_v35 = vld [vmem:[%s1697_s29 + $0xc] ss:$28 sps:$4 sm:$0xff]   ;;  %v1509_v41 = vld [vmem:[%s1697_s29 + $0x3c] ss:$28 sps:$4 sm:$0xff]  }
  0x19   : > { %845 = vmatprep.mubr.bf16.mxu0 %v1500_v33  ;;  %910 = vmatprep.mubr.bf16.mxu1 %v1503_v35  ;;  %v1511_v42 = vld [vmem:[%s1697_s29 + $0x44] ss:$28 sps:$4 sm:$0xff]   ;;  %v1513_v43 = vld [vmem:[%s1697_s29 + $0x38] ss:$28 sps:$4 sm:$0xff]   ;;  %v1515_v45 = vld [vmem:[%s1852_s1 + $0x168] sm:$0xff]  }
  0x1a   : > { %1308 = vmatpush3.bf16.msra.mxu0 %v1480_v14  ;;  %v1514_v44 = vld [vmem:[%s1697_s29 + $0x40] ss:$28 sps:$4 sm:$0xff]   ;;  %v1516_v46 = vld [vmem:[%s1852_s1 + $0x1b0] sm:$0xff]   ;;  %v1517_v47 = vld [vmem:[%s1852_s1 + $0x128] sm:$0xff]  }
  0x1b   : > { %1348 = vmatpush3.bf16.msra.mxu1 %v1481_v15  ;;  %1309 = vmatprep.subr.bf16.mxu0 %v1482_v16  ;;  %v1518_v48 = vld [vmem:[%s1852_s1 + $0x160] sm:$0xff]   ;;  %v1519_v49 = vld [vmem:[%s1852_s1 + $0x1a8] sm:$0xff]   ;;  %v1521_v51 = vld [vmem:[%s1697_s29 + $0x74] ss:$28 sps:$4 sm:$0xff]  }
  0x1c   : > { %1349 = vmatprep.subr.bf16.mxu1 %v1483_v17  ;;  %v1520_v50 = vld [vmem:[%s1852_s1 + $0x120] sm:$0xff]   ;;  %v1523_v52 = vld [vmem:[%s1697_s29 + $0x7c] ss:$28 sps:$4 sm:$0xff]   ;;  %v1525_v53 = vld [vmem:[%s1697_s29 + $0x70] ss:$28 sps:$4 sm:$0xff]  }
  0x1d   : > { %v1526_v54 = vld [vmem:[%s1697_s29 + $0x78] ss:$28 sps:$4 sm:$0xff]   ;;  %v1528_v56 = vld [vmem:[%s1852_s1 + $0x1a0] sm:$0xff]   ;;  %v1533_v61 = vld [vmem:[%s1697_s29 + $0xac] ss:$28 sps:$4 sm:$0xff]  }
  0x1e   : > { %1310 = vmatpush3.bf16.msra.mxu0 %v1484_v18  ;;  %v1527_v55 = vld [vmem:[%s1852_s1 + $0x158] sm:$0xff]   ;;  %v1530_v58 = vld [vmem:[%s1852_s1 + $0x150] sm:$0xff]   ;;  %v1537_v63 = vld [vmem:[%s1697_s29 + $0xa8] ss:$28 sps:$4 sm:$0xff]  }
  0x1f   : > { %1350 = vmatpush3.bf16.msra.mxu1 %v1485_v19  ;;  %1311 = vmatprep.subr.bf16.mxu0 %v1486_v20  ;;  %v1529_v57 = vld [vmem:[%s1852_s1 + $0x118] sm:$0xff]   ;;  %v1532_v60 = vld [vmem:[%s1852_s1 + $0x110] sm:$0xff]   ;;  %v1539_v1 = vld [vmem:[%s1852_s1 + $0x148] sm:$0xff]  }
  0x20   : > { %1351 = vmatprep.subr.bf16.mxu1 %v1487_v21  ;;  %v1531_v59 = vld [vmem:[%s1852_s1 + $0x198] sm:$0xff]   ;;  %v1535_v62 = vld [vmem:[%s1697_s29 + $0xb4] ss:$28 sps:$4 sm:$0xff]   ;;  %v1541_v3 = vld [vmem:[%s1852_s1 + $0x108] sm:$0xff]  }
  0x21   : > { %v1538_v0 = vld [vmem:[%s1697_s29 + $0xb0] ss:$28 sps:$4 sm:$0xff]   ;;  %v1542_v4 = vld [vmem:[%s1852_s1 + $0x140] sm:$0xff]   ;;  %v1549_v10 = vld [vmem:[%s1697_s29 + $0x18] ss:$28 sps:$4 sm:$0xff]  }
  0x22   : > { %1312 = vmatpush3.bf16.msra.mxu0 %v1488_v22  ;;  %v1540_v2 = vld [vmem:[%s1852_s1 + $0x190] sm:$0xff]   ;;  %v1543_v5 = vld [vmem:[%s1852_s1 + $0x188] sm:$0xff]   ;;  %v1544_v6 = vld [vmem:[%s1852_s1 + $0x100] sm:$0xff]  }
  0x23   : > { %1352 = vmatpush3.bf16.msra.mxu1 %v1489_v23  ;;  %1313 = vmatprep.subr.bf16.mxu0 %v1490_v24  ;;  %v1545_v7 = vld [vmem:[%s1697_s29 + $0x10] ss:$28 sps:$4 sm:$0xff]   ;;  %v1548_v9 = vld [vmem:[%s1852_s1 + $0x180] sm:$0xff]   ;;  %v1559_v18 = vld [vmem:[%s1697_s29 + $0xbc] ss:$28 sps:$4 sm:$0xff]  }
  0x24   : > { %1353 = vmatprep.subr.bf16.mxu1 %v1491_v25  ;;  %v1547_v8 = vld [vmem:[%s1697_s29 + $0x14] ss:$28 sps:$4 sm:$0xff]   ;;  %v1551_v11 = vld [vmem:[%s1697_s29 + $0x4c] ss:$28 sps:$4 sm:$0xff]   ;;  %v1554_v15 = vld [vmem:[%s1697_s29 + $0x84] ss:$28 sps:$4 sm:$0xff]  }
  0x25   : > { %v1550_v12 = vld [vmem:[%s1697_s29 + $0x50] ss:$28 sps:$4 sm:$0xff]   ;;  %v1557_v13 = vld [vmem:[%s1697_s29 + $0x88] ss:$28 sps:$4 sm:$0xff]   ;;  %v1558_v16 = vld [vmem:[%s1697_s29 + $0xc0] ss:$28 sps:$4 sm:$0xff]  }
  0x26   : > { %1314 = vmatpush3.bf16.msra.mxu0 %v1492_v26  ;;  %v1553_v14 = vld [vmem:[%s1697_s29 + $0x48] ss:$28 sps:$4 sm:$0xff]   ;;  %v1556_v17 = vld [vmem:[%s1697_s29 + $0x80] ss:$28 sps:$4 sm:$0xff]   ;;  %v1561_v19 = vld [vmem:[%s1697_s29 + $0xb8] ss:$28 sps:$4 sm:$0xff]  }
  0x27   : > { %1354 = vmatpush3.bf16.msra.mxu1 %v1493_v27  ;;  %1315 = vmatprep.subr.bf16.mxu0 %v1494_v28  ;;  %s1213_s29 = sshll.u32 %s1856_s19, 3  ;;  %s1214_s19 = sshll.u32 %s1858_s13, 1 }
  0x28   : > { %1355 = vmatprep.subr.bf16.mxu1 %v1495_v29  ;;  %s1825_s11 = scalar_lea.vmem %s1853_s2, %s1213_s29  ;;  %s187_s16 = scalar_lea.vmem %s1854_s3, %s1214_s19 }
  0x2a   : > { %1316 = vmatpush3.bf16.msra.mxu0 %v1496_v30 }
  0x2b   : > { %1356 = vmatpush3.bf16.msra.mxu1 %v1497_v31  ;;  %1381 = vmatprep.subr.bf16.mxu0 %v1504_v36 }
  0x2c   : > { %1433 = vmatprep.subr.bf16.mxu1 %v1507_v39 }
  0x2d   : > { %846 = vmatmul.mubr.bf16.vlgmr.msra.gmra.mxu0 %v1498_v32 }
  0x2e   : > { %911 = vmatmul.mubr.bf16.vlgmr.msra.gmra.mxu1 %v1501_v34  ;;  %1382 = vmatpush3.bf16.msra.mxu0 %v1505_v37 }
  0x2f   : > { %1383 = vmatprep.subr.bf16.mxu0 %v1506_v38  ;;  %1434 = vmatpush3.bf16.msra.mxu1 %v1507_v39 }
  0x30   : > { %853 = vmatprep.mubr.bf16.mxu0 %v1509_v41  ;;  %918 = vmatprep.mubr.bf16.mxu1 %v1511_v42 }
  0x31   : > { %1435 = vmatprep.subr.bf16.mxu1 %v1516_v46 }
  0x32   : > { %1384 = vmatpush3.bf16.msra.mxu0 %v1508_v40 }
  0x33   : > { %1385 = vmatprep.subr.bf16.mxu0 %v1515_v45  ;;  %1436 = vmatpush3.bf16.msra.mxu1 %v1516_v46 }
  0x34   : > { %1437 = vmatprep.subr.bf16.mxu1 %v1519_v49 }
  0x35   : > { %854 = vmatmul.mubr.bf16.gmra.mxu0 %v1513_v43 }
  0x36   : > { %919 = vmatmul.mubr.bf16.gmra.mxu1 %v1514_v44  ;;  %1386 = vmatpush3.bf16.msra.mxu0 %v1517_v47 }
  0x37   : > { %1387 = vmatprep.subr.bf16.mxu0 %v1518_v48  ;;  %1438 = vmatpush3.bf16.msra.mxu1 %v1519_v49 }
  0x38   : > { %861 = vmatprep.mubr.bf16.mxu0 %v1521_v51  ;;  %926 = vmatprep.mubr.bf16.mxu1 %v1523_v52 }
  0x39   : > { %1439 = vmatprep.subr.bf16.mxu1 %v1528_v56 }
  0x3a   : > { %1388 = vmatpush3.bf16.msra.mxu0 %v1520_v50 }
  0x3b   : > { %1389 = vmatprep.subr.bf16.mxu0 %v1527_v55  ;;  %1440 = vmatpush3.bf16.msra.mxu1 %v1528_v56 }
  0x3c   : > { %1441 = vmatprep.subr.bf16.mxu1 %v1531_v59 }
  0x3d   : > { %862 = vmatmul.mubr.bf16.gmra.mxu0 %v1525_v53 }
  0x3e   : > { %927 = vmatmul.mubr.bf16.gmra.mxu1 %v1526_v54  ;;  %1390 = vmatpush3.bf16.msra.mxu0 %v1529_v57 }
  0x3f   : > { %1391 = vmatprep.subr.bf16.mxu0 %v1530_v58  ;;  %1442 = vmatpush3.bf16.msra.mxu1 %v1531_v59 }
  0x40   : > { %869 = vmatprep.mubr.bf16.mxu0 %v1533_v61  ;;  %934 = vmatprep.mubr.bf16.mxu1 %v1535_v62 }
  0x41   : > { %1443 = vmatprep.subr.bf16.mxu1 %v1540_v2 }
  0x42   : > { %1392 = vmatpush3.bf16.msra.mxu0 %v1532_v60 }
  0x43   : > { %1393 = vmatprep.subr.bf16.mxu0 %v1539_v1  ;;  %1444 = vmatpush3.bf16.msra.mxu1 %v1540_v2 }
  0x44   : > { %1445 = vmatprep.subr.bf16.mxu1 %v1543_v5 }
  0x45   : > { %870 = vmatmul.mubr.bf16.gmra.mxu0 %v1537_v63 }
  0x46   : > { %935 = vmatmul.mubr.bf16.gmra.mxu1 %v1538_v0  ;;  %1394 = vmatpush3.bf16.msra.mxu0 %v1541_v3 }
  0x47   : > { %1395 = vmatprep.subr.bf16.mxu0 %v1542_v4  ;;  %1446 = vmatpush3.bf16.msra.mxu1 %v1543_v5 }
  0x48   : > { %975 = vmatprep.mubr.bf16.mxu0 %v1547_v8  ;;  %1447 = vmatprep.subr.bf16.mxu1 %v1548_v9 }
  0x49   : > { %1449 = vmatprep.mubr.bf16.mxu1 %v1549_v10 }
  0x4a   : > { %1396 = vmatpush3.bf16.msra.mxu0 %v1544_v6 }
  0x4b   : > { %1448 = vmatpush3.bf16.msra.mxu1 %v1548_v9 }
  0x4d   : > { %976 = vmatmul.mubr.bf16.vlgmr.msra.gmra.mxu0 %v1545_v7 }
  0x4e   : > { %983 = vmatprep.mubr.bf16.mxu0 %v1551_v11  ;;  %1450 = vmatmul.mubr.bf16.vlgmr.msra.gmra.mxu1 %v1550_v12 }
  0x4f   : > { %1453 = vmatprep.mubr.bf16.mxu1 %v1557_v13 }
  0x55   : > { %984 = vmatmul.mubr.bf16.gmra.mxu0 %v1553_v14 }
  0x56   : > { %991 = vmatprep.mubr.bf16.mxu0 %v1554_v15  ;;  %1454 = vmatmul.mubr.bf16.gmra.mxu1 %v1558_v16 }
  0x5d   : > { %992 = vmatmul.mubr.bf16.gmra.mxu0 %v1556_v17 }
  0x5e   : > { %999 = vmatprep.mubr.bf16.mxu0 %v1559_v18 }
  0x65   : > { %1000 = vmatmul.mubr.bf16.gmra.mxu0 %v1561_v19 }
  0xed   : > { %v1317_v20 = vpop.f32.mrf.mxu0 }
  0xee   : > { %v1357_v21 = vpop.f32.mrf.mxu1 }
  0xef   : > { %v1318_v22 = vpop.f32.mrf.mxu0 }
  0xf0   : > { %v1358_v23 = vpop.f32.mrf.mxu1  ;;  %v1319_v51 = vadd.f32 %v1318_v22, %v1317_v20 }
  0xf1   : > { %v1320_v24 = vpop.f32.mrf.mxu0  ;;  %v1359_v52 = vadd.f32 %v1358_v23, %v1357_v21 }
  0xf2   : > { %v1360_v25 = vpop.f32.mrf.mxu1 }
  0xf3   : > { %v1321_v26 = vpop.f32.mrf.mxu0  ;;  %v913_v58 = vadd.f32 %v1359_v52, %v1319_v51 }
  0xf4   : > { %v1361_v27 = vpop.f32.mrf.mxu1  ;;  %v1322_v54 = vadd.f32 %v1321_v26, %v1320_v24 }
  0xf5   : > { %v1323_v28 = vpop.f32.mrf.mxu0  ;;  %v1362_v55 = vadd.f32 %v1361_v27, %v1360_v25 }
  0xf6   : > { %v1363_v29 = vpop.f32.mrf.mxu1 }
  0xf7   : > { %v1324_v30 = vpop.f32.mrf.mxu0  ;;  %v916_v63 = vadd.f32 %v1362_v55, %v1322_v54 }
  0xf8   : > { %v1364_v31 = vpop.f32.mrf.mxu1  ;;  %v1325_v2 = vadd.f32 %v1324_v30, %v1323_v28 }
  0xf9   : > { %v1326_v32 = vpop.f32.mrf.mxu0  ;;  %v1365_v3 = vadd.f32 %v1364_v31, %v1363_v29 }
  0xfa   : > { %v1366_v33 = vpop.f32.mrf.mxu1 }
  0xfb   : > { %v1327_v34 = vpop.f32.mrf.mxu0  ;;  %v921_v13 = vadd.f32 %v1365_v3, %v1325_v2 }
  0xfc   : > { %v1367_v35 = vpop.f32.mrf.mxu1  ;;  %v1328_v9 = vadd.f32 %v1327_v34, %v1326_v32 }
  0xfd   : > { %v1329_v36 = vpop.f32.mrf.mxu0  ;;  %v1368_v10 = vadd.f32 %v1367_v35, %v1366_v33 }
  0xfe   : > { %v1369_v37 = vpop.f32.mrf.mxu1 }
  0xff   : > { %v1330_v38 = vpop.f32.mrf.mxu0  ;;  %v924_v18 = vadd.f32 %v1368_v10, %v1328_v9 }
 0x100   : > { %v1370_v39 = vpop.f32.mrf.mxu1  ;;  %v1331_v21 = vadd.f32 %v1330_v38, %v1329_v36 }
 0x101   : > { %v1332_v40 = vpop.f32.mrf.mxu0  ;;  %v1371_v22 = vadd.f32 %v1370_v39, %v1369_v37 }
 0x102   : > { %v1372_v41 = vpop.f32.mrf.mxu1 }
 0x103   : > { %v1333_v42 = vpop.f32.mrf.mxu0  ;;  %v929_v31 = vadd.f32 %v1371_v22, %v1331_v21 }
 0x104   : > { %v1373_v43 = vpop.f32.mrf.mxu1  ;;  %v1334_v27 = vadd.f32 %v1333_v42, %v1332_v40 }
 0x105   : > { %v1805_v44 = vpop.f32.mrf.mxu0  ;;  %v1374_v28 = vadd.f32 %v1373_v43, %v1372_v41 }
 0x106   : > { %v1807_v45 = vpop.f32.mrf.mxu1 }
 0x107   : > { %v1809_v46 = vpop.f32.mrf.mxu0  ;;  %v932_v51 = vadd.f32 %v1374_v28, %v1334_v27 }
 0x108   : > { %v1811_v47 = vpop.f32.mrf.mxu1  ;;  %v1337_v38 = vadd.f32 %v1809_v46, %v1805_v44 }
 0x109   : > { %v1813_v48 = vpop.f32.mrf.mxu0  ;;  %v1377_v39 = vadd.f32 %v1811_v47, %v1807_v45 }
 0x10a   : > { %v1817_v50 = vpop.f32.mrf.mxu1 }
 0x10b   : > { %v1815_v49 = vpop.f32.mrf.mxu0  ;;  %v937_v45 = vadd.f32 %v1377_v39, %v1337_v38 }
 0x10c   : > { %v1819_v56 = vpop.f32.mrf.mxu1 }
 0x10d   : > { %v1397_v53 = vpop.f32.mrf.mxu0 }
 0x10e   : > { %v1451_v61 = vpop.f32.mrf.mxu1 }
 0x10f   : > { %v1398_v57 = vpop.f32.mrf.mxu0 }
 0x110   : > { %v1399_v59 = vadd.f32 %v1398_v57, %v1397_v53  ;;  %v1042_v1 = vpop.f32.mrf.mxu1  ;;  %v1340_v57 = vadd.f32 %v1815_v49, %v1813_v48 }
 0x111   : > { %v1400_v60 = vpop.f32.mrf.mxu0 }
 0x112   : > { %v978_v62 = vadd.f32 %v1399_v59, %v913_v58  ;;  %v1452_v7 = vpop.f32.mrf.mxu1  ;;  %v1380_v58 = vadd.f32 %v1819_v56, %v1817_v50 }
 0x113   : > { %v1401_v0 = vpop.f32.mrf.mxu0 }
 0x114   : > { %v1402_v4 = vadd.f32 %v1401_v0, %v1400_v60  ;;  %v1043_v5 = vadd.f32 %v1042_v1, %v978_v62  ;;  %v1045_v12 = vpop.f32.mrf.mxu1 }
 0x115   : > { %v1403_v6 = vpop.f32.mrf.mxu0 }
 0x116   : > { %1073 = vst [vmem:[%s1825_s11] sm:$0xff] %v1043_v5  ;;  %v981_v8 = vadd.f32 %v1402_v4, %v916_v63  ;;  %v1455_v20 = vpop.f32.mrf.mxu1  ;;  %v1094_v42 = vmul.f32 %v1043_v5, %v1043_v5  ;;  %v940_v4 = vadd.f32 %v1380_v58, %v1340_v57 }
 0x117   : > { %v1404_v11 = vpop.f32.mrf.mxu0 }
 0x118   : > { %v1405_v14 = vadd.f32 %v1404_v11, %v1403_v6  ;;  %v1046_v15 = vadd.f32 %v1045_v12, %v981_v8  ;;  %v1058_v30 = vpop.f32.mrf.mxu1 }
 0x119   : > { %v1406_v16 = vpop.f32.mrf.mxu0 }
 0x11a   : > { %v986_v17 = vadd.f32 %v1405_v14, %v921_v13  ;;  %1074 = vst [vmem:[%s1825_s11 + $0x8] sm:$0xff] %v1046_v15  ;;  %v1095_v52 = vmul.f32 %v1046_v15, %v1046_v15  ;;  %v1456_v37 = vpop.f32.mrf.mxu1  ;;  %v1081_v54 = vadd.f32 %v1046_v15, %v1043_v5 }
 0x11b   : > { %v1407_v19 = vpop.f32.mrf.mxu0 }
 0x11c   : > { %v1051_v23 = vadd.f32 %v1451_v61, %v986_v17  ;;  %v1408_v24 = vadd.f32 %v1407_v19, %v1406_v16  ;;  %v1102_v59 = vadd.f32 %v1095_v52, %v1094_v42  ;;  %v1061_v46 = vpop.f32.mrf.mxu1 }
 0x11d   : > { %v1409_v25 = vpop.f32.mrf.mxu0 }
 0x11e   : > { %1075 = vst [vmem:[%s1825_s11 + $0x10] sm:$0xff] %v1051_v23  ;;  %v989_v26 = vadd.f32 %v1408_v24, %v924_v18  ;;  %v1096_v43 = vmul.f32 %v1051_v23, %v1051_v23  ;;  %v1082_v47 = vadd.f32 %v1081_v54, %v1051_v23 }
 0x11f   : > { %v1410_v29 = vpop.f32.mrf.mxu0 }
 0x120   : > { %v1054_v32 = vadd.f32 %v1452_v7, %v989_v26  ;;  %v1411_v33 = vadd.f32 %v1410_v29, %v1409_v25  ;;  %v1103_v63 = vadd.f32 %v1102_v59, %v1096_v43 }
 0x121   : > { %v1412_v34 = vpop.f32.mrf.mxu0 }
 0x122   : > { %1076 = vst [vmem:[%s1825_s11 + $0x18] sm:$0xff] %v1054_v32  ;;  %v994_v35 = vadd.f32 %v1411_v33, %v929_v31  ;;  %v1097_v44 = vmul.f32 %v1054_v32, %v1054_v32  ;;  %v1083_v1 = vadd.f32 %v1082_v47, %v1054_v32 }
 0x123   : > { %v1413_v36 = vpop.f32.mrf.mxu0 }
 0x124   : > { %v1059_v40 = vadd.f32 %v1058_v30, %v994_v35  ;;  %v1414_v41 = vadd.f32 %v1413_v36, %v1412_v34  ;;  %v1104_v48 = vadd.f32 %v1103_v63, %v1097_v44 }
 0x125   : > { %v1415_v53 = vpop.f32.mrf.mxu0 }
 0x126   : > { %1077 = vst [vmem:[%s1825_s11 + $0x20] sm:$0xff] %v1059_v40  ;;  %v997_v55 = vadd.f32 %v1414_v41, %v932_v51  ;;  %v1098_v2 = vmul.f32 %v1059_v40, %v1059_v40  ;;  %v1084_v50 = vadd.f32 %v1083_v1, %v1059_v40 }
 0x127   : > { %v1416_v60 = vpop.f32.mrf.mxu0 }
 0x128   : > { %v1062_v61 = vadd.f32 %v1061_v46, %v997_v55  ;;  %v1417_v62 = vadd.f32 %v1416_v60, %v1415_v53  ;;  %v1105_v7 = vadd.f32 %v1104_v48, %v1098_v2 }
 0x129   : > { %v1418_v0 = vpop.f32.mrf.mxu0 }
 0x12a   : > { %1078 = vst [vmem:[%s1825_s11 + $0x28] sm:$0xff] %v1062_v61  ;;  %v1002_v3 = vadd.f32 %v1417_v62, %v937_v45  ;;  %v1099_v56 = vmul.f32 %v1062_v61, %v1062_v61  ;;  %v1085_v8 = vadd.f32 %v1084_v50, %v1062_v61 }
 0x12b   : > { %v1419_v49 = vpop.f32.mrf.mxu0 }
 0x12c   : > { %v1067_v5 = vadd.f32 %v1455_v20, %v1002_v3  ;;  %v1420_v6 = vadd.f32 %v1419_v49, %v1418_v0  ;;  %v1106_v11 = vadd.f32 %v1105_v7, %v1099_v56 }
 0x12e   : > { %1079 = vst [vmem:[%s1825_s11 + $0x30] sm:$0xff] %v1067_v5  ;;  %v1100_v9 = vmul.f32 %v1067_v5, %v1067_v5  ;;  %v1005_v10 = vadd.f32 %v1420_v6, %v940_v4  ;;  %v1086_v12 = vadd.f32 %v1085_v8, %v1067_v5 }
 0x130   : > { %v1070_v13 = vadd.f32 %v1456_v37, %v1005_v10  ;;  %v1107_v14 = vadd.f32 %v1106_v11, %v1100_v9 }
 0x132   : > { %1080 = vst [vmem:[%s1825_s11 + $0x38] sm:$0xff] %v1070_v13  ;;  %v1087_v15 = vadd.f32 %v1086_v12, %v1070_v13  ;;  %v1101_v16 = vmul.f32 %v1070_v13, %v1070_v13 }
 0x134   : > { %v1088_v17 = vrot.slane %v1087_v15, 4  ;;  %v1108_v18 = vadd.f32 %v1107_v14, %v1101_v16 }
 0x136   : > { %v1089_v19 = vadd.f32 %v1088_v17, %v1087_v15  ;;  %v1109_v20 = vrot.slane %v1108_v18, 4 }
 0x138   : > { %v1090_v21 = vrot.slane %v1089_v19, 2  ;;  %v1110_v22 = vadd.f32 %v1109_v20, %v1108_v18 }
 0x13a   : > { %v1091_v23 = vadd.f32 %v1090_v21, %v1089_v19  ;;  %v1111_v24 = vrot.slane %v1110_v22, 2 }
 0x13c   : > { %v1092_v25 = vrot.slane %v1091_v23, 1  ;;  %v1112_v26 = vadd.f32 %v1111_v24, %v1110_v22 }
 0x13e   : > { %v1113_v27 = vrot.slane %v1112_v26, 1  ;;  %v1093_v28 = vadd.f32 %v1092_v25, %v1091_v23 }
 0x140   : > { %v1114_v29 = vadd.f32 %v1113_v27, %v1112_v26 }
 0x142   : > { %v1116_v30 = vsel %vm1115_vm0, %v1093_v28, %v1114_v29 }
 0x143   : > { %1117 = vst [vmem:[%s187_s16] sm:$0x3] %v1116_v30 }
 0x144 PF: > { %s14_s12 = sadd.s32 1, %s1568_s12  }
 0x145   : > { %p11_p5 = scmp.ge.s32.totalorder %s14_s12, 6  }
 0x147   :  { %13 = sbr.rel (!%p11_p5) target bundleno = 1 (0x1), region = 70 }

</bundles_post_ra>
